<compile_context>
chip_gen: v6e
topology: v6e:2x2x1
jax: 0.10.0
libtpu: 0.0.40
codegen_flags: <defaults>
</compile_context>

<pallas_src>
import jax
import jax.numpy as jnp
from jax.experimental import pallas as pl
from jax.experimental.pallas import tpu as pltpu

_LANE = 128
_MAX_TILE_HW = 32768   # max lanes per HW block (multiple of 128)


def _cdiv(a, b):
    return (a + b - 1) // b


def _round_up(x, m):
    return _cdiv(x, m) * m


def _n_block(dtype):
    """Sublane block: 2x the native packed tile height for the input dtype."""
    itemsize = jnp.dtype(dtype).itemsize
    if itemsize >= 4:
        return 16
    if itemsize == 2:
        return 32
    return 64


def _make_dice_sums_kernel(with_mask, need_col_mask, tile_hw, kps, hw, n_blk):
    def kernel(*refs):
        if with_mask:
            x_ref, t_ref, m_ref, a_ref, b_ref, c_ref = refs
        else:
            x_ref, t_ref, a_ref, b_ref, c_ref = refs

        k = pl.program_id(2)

        # Output blocks are resident across the (arbitrary) k axis: init at k==0.
        @pl.when(k == 0)
        def _():
            a_ref[...] = jnp.zeros_like(a_ref)
            b_ref[...] = jnp.zeros_like(b_ref)
            c_ref[...] = jnp.zeros_like(c_ref)

        # Upcast on-chip; HBM traffic stays at the native dtype width.
        x = x_ref[...].astype(jnp.float32)
        t = t_ref[...].astype(jnp.float32)

        if need_col_mask:
            # Zero lanes whose *intended* global column is >= HW (ragged last
            # block and phantom blocks whose DMA index was clamped).
            h = pl.program_id(0)
            base = (h * kps + k) * tile_hw
            col = base + jax.lax.broadcasted_iota(jnp.int32, (n_blk, tile_hw), 1)
            valid = col < hw
            x = jnp.where(valid, x, 0.0)
            t = jnp.where(valid, t, 0.0)

        if with_mask:
            m = m_ref[...].astype(jnp.float32)
            x = x * m
            t = t * m

        # Lane-axis (XLU) reductions; VPU muls are free filler under the HBM
        # bottleneck on v5e/v6e.
        a_ref[...] += jnp.sum(x * t, axis=1, keepdims=True)
        b_ref[...] += jnp.sum(x * x, axis=1, keepdims=True)
        c_ref[...] += jnp.sum(t * t, axis=1, keepdims=True)

    return kernel


def _dice_partial_sums_pallas(pred2, tgt2, mask2):
    """pred2/tgt2/mask2: (N, HW) arrays (mask2 may be None).

    Returns per-sample f32 sums a=sum(x*t), b=sum(x*x), c=sum(t*t), each (N,).
    """
    N, HW = pred2.shape
    with_mask = mask2 is not None

    n_blk = _n_block(pred2.dtype)
    n_blocks_n = _cdiv(N, n_blk)
    n_pad = n_blocks_n * n_blk

    # Near-equal 128-aligned HW chunks (keeps padding minimal).
    num_chunks = _cdiv(HW, _MAX_TILE_HW)
    tile_hw = _round_up(_cdiv(HW, num_chunks), _LANE)
    total_hw_blocks = _cdiv(HW, tile_hw)

    # Guarantee >=2 parallel blocks (v7x megacore) when N collapses to 1 block.
    n_splits = 2 if (n_blocks_n < 2 and total_hw_blocks >= 2) else 1
    kps = _cdiv(total_hw_blocks, n_splits)           # k-steps per split
    has_phantom = n_splits * kps > total_hw_blocks
    need_col_mask = (n_splits * kps * tile_hw) > HW

    inputs = [pred2, tgt2] + ([mask2] if with_mask else [])

    def in_map(h, i, k):
        j = h * kps + k
        if has_phantom:
            # Phantom blocks re-read the last valid block; the in-kernel lane
            # mask zeroes their contribution.
            j = jnp.minimum(j, total_hw_blocks - 1)
        return (i, j)

    in_specs = [pl.BlockSpec((n_blk, tile_hw), in_map) for _ in inputs]
    out_specs = [pl.BlockSpec((None, n_blk, 1), lambda h, i, k: (h, i, 0))
                 for _ in range(3)]
    out_shape = tuple(jax.ShapeDtypeStruct((n_splits, n_pad, 1), jnp.float32)
                      for _ in range(3))

    bytes_accessed = int(sum(x.size * x.dtype.itemsize for x in inputs)
                         + 3 * n_splits * n_pad * 4)
    flops = (8 if with_mask else 6) * N * HW

    a, b, c = pl.pallas_call(
        _make_dice_sums_kernel(with_mask, need_col_mask, tile_hw, kps, HW, n_blk),
        out_shape=out_shape,
        grid_spec=pltpu.PrefetchScalarGridSpec(
            num_scalar_prefetch=0,
            grid=(n_splits, n_blocks_n, kps),
            in_specs=in_specs,
            out_specs=out_specs,
        ),
        compiler_params=pltpu.CompilerParams(
            dimension_semantics=("parallel", "parallel", "arbitrary"),
            vmem_limit_bytes=32 * 1024 * 1024),
        cost_estimate=pl.CostEstimate(flops=flops, transcendentals=0,
                                      bytes_accessed=bytes_accessed),
    )(*inputs)

    # Combine the split halves and strip padded rows (garbage rows never mix
    # with valid rows: all reductions so far are per-row).
    a = jnp.sum(a[..., 0], axis=0)[:N]
    b = jnp.sum(b[..., 0], axis=0)[:N]
    c = jnp.sum(c[..., 0], axis=0)[:N]
    return a, b, c


class DiceLoss:
    """JAX/Pallas port of easymd DiceLoss (forward only)."""

    def __init__(self, eps=1e-06, reduction='mean', loss_weight=1.0):
        self.eps = eps
        self.reduction = reduction
        self.loss_weight = loss_weight

    def __call__(self, pred, target, weight=None, mask=None,
                 avg_factor=None, reduction_override=None):
        assert reduction_override in (None, 'none', 'mean', 'sum')
        reduction = reduction_override if reduction_override else self.reduction

        N, H, W = pred.shape
        HW = H * W
        pred2 = pred.reshape(N, HW)          # native dtype; kernel upcasts on-chip
        tgt2 = target.reshape(N, HW)
        mask2 = None if mask is None else mask.reshape(N, HW)

        a, b, c = _dice_partial_sums_pallas(pred2, tgt2, mask2)

        # O(N) finalize + weight_reduce_loss semantics (mmdet @weighted_loss),
        # left in XLA — negligible next to the HBM-bound kernel.
        loss = 1.0 - 2.0 * a / ((b + self.eps) + (c + self.eps))
        if weight is not None:
            loss = loss * weight.astype(jnp.float32)
        if avg_factor is None:
            if reduction == 'mean':
                loss = jnp.mean(loss)
            elif reduction == 'sum':
                loss = jnp.sum(loss)
            # 'none' -> leave as (N,)
        else:
            if reduction == 'mean':
                loss = jnp.sum(loss) / avg_factor
            elif reduction != 'none':
                raise ValueError('avg_factor can not be used with reduction="sum"')
        return self.loss_weight * loss


def _reference(pred, target, weight, mask, eps, reduction, loss_weight):
    # Pure-JAX reference mirroring the PyTorch code.
    N, H, W = pred.shape
    x = pred.reshape(N, H * W).astype(jnp.float32)
    t = target.reshape(N, H * W).astype(jnp.float32)
    if mask is not None:
        m = mask.reshape(N, H * W).astype(jnp.float32)
        x = x * m
        t = t * m
    a = jnp.sum(x * t, axis=1)
    b = jnp.sum(x * x, axis=1) + eps
    c = jnp.sum(t * t, axis=1) + eps
    loss = 1.0 - 2.0 * a / (b + c)
    if weight is not None:
        loss = loss * weight
    if reduction == 'mean':
        loss = jnp.mean(loss)
    elif reduction == 'sum':
        loss = jnp.sum(loss)
    return loss_weight * loss


if __name__ == "__main__":
    key = jax.random.PRNGKey(0)
    k1, k2, k3, k4 = jax.random.split(key, 4)

    loss_mod = DiceLoss(eps=1e-06, reduction='mean', loss_weight=1.0)

    # Case 1: small canonical shape, with mask + per-sample weight (f32).
    N, H, W = 4, 16, 16
    pred = jax.nn.sigmoid(jax.random.normal(k1, (N, H, W), jnp.float32))
    target = (jax.random.uniform(k2, (N, H, W)) > 0.5).astype(jnp.float32)
    mask = (jax.random.uniform(k3, (N, H, W)) > 0.2).astype(jnp.float32)
    weight = jax.random.uniform(k4, (N,), jnp.float32)

    out1 = loss_mod(pred, target, weight=weight, mask=mask)
    out2 = loss_mod(pred, target)  # no-mask kernel variant
    jax.block_until_ready(out1)
    jax.block_until_ready(out2)
    ref1 = _reference(pred, target, weight, mask, 1e-06, 'mean', 1.0)
    ref2 = _reference(pred, target, None, None, 1e-06, 'mean', 1.0)
    assert jnp.allclose(out1, ref1, rtol=1e-5, atol=1e-6), (out1, ref1)
    assert jnp.allclose(out2, ref2, rtol=1e-5, atol=1e-6), (out2, ref2)

    # Case 2: N not a multiple of the sublane block, bf16 inputs (in-kernel
    # upcast, dtype-aware sublane block), 'none' reduction.
    k5, k6, k7 = jax.random.split(k4, 3)
    N2, H2, W2 = 5, 96, 96
    pred_b = jax.nn.sigmoid(jax.random.normal(k5, (N2, H2, W2))).astype(jnp.bfloat16)
    target_b = (jax.random.uniform(k6, (N2, H2, W2)) > 0.5).astype(jnp.bfloat16)
    mask_b = (jax.random.uniform(k7, (N2, H2, W2)) > 0.2).astype(jnp.bfloat16)
    out3 = loss_mod(pred_b, target_b, mask=mask_b, reduction_override='none')
    jax.block_until_ready(out3)
    ref3 = _reference(pred_b, target_b, None, mask_b, 1e-06, 'none', 1.0)
    assert jnp.allclose(out3, ref3, rtol=2e-2, atol=2e-3), (out3, ref3)

    # Case 3: HW > _MAX_TILE_HW with a ragged last block and an odd block count
    # -> exercises the size-2 parallel HW split, the clamped phantom block and
    # the in-kernel lane mask.
    k8, k9 = jax.random.split(k5, 2)
    N3, H3, W3 = 3, 82, 800
    pred_c = jax.nn.sigmoid(jax.random.normal(k8, (N3, H3, W3), jnp.float32))
    target_c = (jax.random.uniform(k9, (N3, H3, W3)) > 0.5).astype(jnp.float32)
    out4 = loss_mod(pred_c, target_c, reduction_override='sum')
    jax.block_until_ready(out4)
    ref4 = _reference(pred_c, target_c, None, None, 1e-06, 'sum', 1.0)
    assert jnp.allclose(out4, ref4, rtol=1e-4, atol=1e-5), (out4, ref4)

    print("KERNEL_OK")
</pallas_src>

<mosaic_0001>
module attributes {stable_mosaic.version = 11 : i64} {
  func.func @kernel(%arg0: i32, %arg1: i32, %arg2: i32, %arg3: memref<16x256xf32, #tpu.memory_space<vmem>>, %arg4: memref<16x256xf32, #tpu.memory_space<vmem>>, %arg5: memref<16x256xf32, #tpu.memory_space<vmem>>, %arg6: memref<1x16x1xf32, #tpu.memory_space<vmem>>, %arg7: memref<1x16x1xf32, #tpu.memory_space<vmem>>, %arg8: memref<1x16x1xf32, #tpu.memory_space<vmem>>) attributes {dimension_semantics = [#tpu.dimension_semantics<parallel>, #tpu.dimension_semantics<parallel>, #tpu.dimension_semantics<arbitrary>], iteration_bounds = array<i64: 1, 1, 1>, scalar_prefetch = 0 : i64, scratch_operands = 0 : i64, tpu.core_type = #tpu.core_type<tc>, window_params = [{transform_indices = @transform_0, window_bounds = array<i64: 16, 256>}, {transform_indices = @transform_1, window_bounds = array<i64: 16, 256>}, {transform_indices = @transform_2, window_bounds = array<i64: 16, 256>}, {transform_indices = @transform_3, window_bounds = array<i64: 1, 16, 1>}, {transform_indices = @transform_4, window_bounds = array<i64: 1, 16, 1>}, {transform_indices = @transform_5, window_bounds = array<i64: 1, 16, 1>}]} {
    %c0_i32 = arith.constant 0 : i32
    %0 = arith.cmpi eq, %arg2, %c0_i32 : i32
    %1 = arith.extui %0 : i1 to i32
    %c0_i32_0 = arith.constant 0 : i32
    %2 = arith.cmpi ne, %1, %c0_i32_0 : i32
    scf.if %2 {
      %cst_26 = arith.constant 0.000000e+00 : f32
      %35 = vector.broadcast %cst_26 : f32 to vector<16x1xf32>
      %c0_27 = arith.constant 0 : index
      %c0_28 = arith.constant 0 : index
      %c0_29 = arith.constant 0 : index
      %36 = vector.load %arg6[%c0_27, %c0_28, %c0_29] : memref<1x16x1xf32, #tpu.memory_space<vmem>>, vector<1x16x1xf32>
      %37 = vector.shape_cast %36 : vector<1x16x1xf32> to vector<16x1xf32>
      %38 = vector.shape_cast %35 : vector<16x1xf32> to vector<1x16x1xf32>
      tpu.vector_store %arg6[%c0_27, %c0_28, %c0_29], %38 {strides = array<i32>} : memref<1x16x1xf32, #tpu.memory_space<vmem>>, vector<1x16x1xf32>,
      %cst_30 = arith.constant 0.000000e+00 : f32
      %39 = vector.broadcast %cst_30 : f32 to vector<16x1xf32>
      %c0_31 = arith.constant 0 : index
      %c0_32 = arith.constant 0 : index
      %c0_33 = arith.constant 0 : index
      %40 = vector.load %arg7[%c0_31, %c0_32, %c0_33] : memref<1x16x1xf32, #tpu.memory_space<vmem>>, vector<1x16x1xf32>
      %41 = vector.shape_cast %40 : vector<1x16x1xf32> to vector<16x1xf32>
      %42 = vector.shape_cast %39 : vector<16x1xf32> to vector<1x16x1xf32>
      tpu.vector_store %arg7[%c0_31, %c0_32, %c0_33], %42 {strides = array<i32>} : memref<1x16x1xf32, #tpu.memory_space<vmem>>, vector<1x16x1xf32>,
      %cst_34 = arith.constant 0.000000e+00 : f32
      %43 = vector.broadcast %cst_34 : f32 to vector<16x1xf32>
      %c0_35 = arith.constant 0 : index
      %c0_36 = arith.constant 0 : index
      %c0_37 = arith.constant 0 : index
      %44 = vector.load %arg8[%c0_35, %c0_36, %c0_37] : memref<1x16x1xf32, #tpu.memory_space<vmem>>, vector<1x16x1xf32>
      %45 = vector.shape_cast %44 : vector<1x16x1xf32> to vector<16x1xf32>
      %46 = vector.shape_cast %43 : vector<16x1xf32> to vector<1x16x1xf32>
      tpu.vector_store %arg8[%c0_35, %c0_36, %c0_37], %46 {strides = array<i32>} : memref<1x16x1xf32, #tpu.memory_space<vmem>>, vector<1x16x1xf32>,
    } else {
    }
    %c0 = arith.constant 0 : index
    %c0_1 = arith.constant 0 : index
    %3 = vector.load %arg3[%c0, %c0_1] : memref<16x256xf32, #tpu.memory_space<vmem>>, vector<16x256xf32>
    %c0_2 = arith.constant 0 : index
    %c0_3 = arith.constant 0 : index
    %4 = vector.load %arg4[%c0_2, %c0_3] : memref<16x256xf32, #tpu.memory_space<vmem>>, vector<16x256xf32>
    %c0_4 = arith.constant 0 : index
    %c0_5 = arith.constant 0 : index
    %5 = vector.load %arg5[%c0_4, %c0_5] : memref<16x256xf32, #tpu.memory_space<vmem>>, vector<16x256xf32>
    %6 = arith.mulf %3, %5 : vector<16x256xf32>
    %7 = arith.mulf %4, %5 : vector<16x256xf32>
    %c0_6 = arith.constant 0 : index
    %c0_7 = arith.constant 0 : index
    %c0_8 = arith.constant 0 : index
    %8 = vector.load %arg6[%c0_6, %c0_7, %c0_8] : memref<1x16x1xf32, #tpu.memory_space<vmem>>, vector<1x16x1xf32>
    %9 = vector.shape_cast %8 : vector<1x16x1xf32> to vector<16x1xf32>
    %10 = arith.mulf %6, %7 : vector<16x256xf32>
    %cst = arith.constant dense<0.000000e+00> : vector<16xf32>
    %11 = vector.multi_reduction <add>, %10, %cst [1] : vector<16x256xf32> to vector<16xf32>
    %12 = vector.shape_cast %11 : vector<16xf32> to vector<16x1xf32>
    %13 = arith.addf %9, %12 : vector<16x1xf32>
    %c0_9 = arith.constant 0 : index
    %c0_10 = arith.constant 0 : index
    %c0_11 = arith.constant 0 : index
    %14 = vector.load %arg6[%c0_9, %c0_10, %c0_11] : memref<1x16x1xf32, #tpu.memory_space<vmem>>, vector<1x16x1xf32>
    %15 = vector.shape_cast %14 : vector<1x16x1xf32> to vector<16x1xf32>
    %16 = vector.shape_cast %13 : vector<16x1xf32> to vector<1x16x1xf32>
    tpu.vector_store %arg6[%c0_9, %c0_10, %c0_11], %16 {strides = array<i32>} : memref<1x16x1xf32, #tpu.memory_space<vmem>>, vector<1x16x1xf32>,
    %c0_12 = arith.constant 0 : index
    %c0_13 = arith.constant 0 : index
    %c0_14 = arith.constant 0 : index
    %17 = vector.load %arg7[%c0_12, %c0_13, %c0_14] : memref<1x16x1xf32, #tpu.memory_space<vmem>>, vector<1x16x1xf32>
    %18 = vector.shape_cast %17 : vector<1x16x1xf32> to vector<16x1xf32>
    %19 = arith.mulf %6, %6 : vector<16x256xf32>
    %cst_15 = arith.constant dense<0.000000e+00> : vector<16xf32>
    %20 = vector.multi_reduction <add>, %19, %cst_15 [1] : vector<16x256xf32> to vector<16xf32>
    %21 = vector.shape_cast %20 : vector<16xf32> to vector<16x1xf32>
    %22 = arith.addf %18, %21 : vector<16x1xf32>
    %c0_16 = arith.constant 0 : index
    %c0_17 = arith.constant 0 : index
    %c0_18 = arith.constant 0 : index
    %23 = vector.load %arg7[%c0_16, %c0_17, %c0_18] : memref<1x16x1xf32, #tpu.memory_space<vmem>>, vector<1x16x1xf32>
    %24 = vector.shape_cast %23 : vector<1x16x1xf32> to vector<16x1xf32>
    %25 = vector.shape_cast %22 : vector<16x1xf32> to vector<1x16x1xf32>
    tpu.vector_store %arg7[%c0_16, %c0_17, %c0_18], %25 {strides = array<i32>} : memref<1x16x1xf32, #tpu.memory_space<vmem>>, vector<1x16x1xf32>,
    %c0_19 = arith.constant 0 : index
    %c0_20 = arith.constant 0 : index
    %c0_21 = arith.constant 0 : index
    %26 = vector.load %arg8[%c0_19, %c0_20, %c0_21] : memref<1x16x1xf32, #tpu.memory_space<vmem>>, vector<1x16x1xf32>
    %27 = vector.shape_cast %26 : vector<1x16x1xf32> to vector<16x1xf32>
    %28 = arith.mulf %7, %7 : vector<16x256xf32>
    %cst_22 = arith.constant dense<0.000000e+00> : vector<16xf32>
    %29 = vector.multi_reduction <add>, %28, %cst_22 [1] : vector<16x256xf32> to vector<16xf32>
    %30 = vector.shape_cast %29 : vector<16xf32> to vector<16x1xf32>
    %31 = arith.addf %27, %30 : vector<16x1xf32>
    %c0_23 = arith.constant 0 : index
    %c0_24 = arith.constant 0 : index
    %c0_25 = arith.constant 0 : index
    %32 = vector.load %arg8[%c0_23, %c0_24, %c0_25] : memref<1x16x1xf32, #tpu.memory_space<vmem>>, vector<1x16x1xf32>
    %33 = vector.shape_cast %32 : vector<1x16x1xf32> to vector<16x1xf32>
    %34 = vector.shape_cast %31 : vector<16x1xf32> to vector<1x16x1xf32>
    tpu.vector_store %arg8[%c0_23, %c0_24, %c0_25], %34 {strides = array<i32>} : memref<1x16x1xf32, #tpu.memory_space<vmem>>, vector<1x16x1xf32>,
    return
  }
  func.func @transform_0(%arg0: i32, %arg1: i32, %arg2: i32) -> (i32, i32) {
    %c1_i32 = arith.constant 1 : i32
    %0 = arith.muli %arg0, %c1_i32 : i32
    %1 = arith.addi %0, %arg2 : i32
    %c0_i32 = arith.constant 0 : i32
    return %arg1, %1 : i32, i32
  }
  func.func @transform_1(%arg0: i32, %arg1: i32, %arg2: i32) -> (i32, i32) {
    %c1_i32 = arith.constant 1 : i32
    %0 = arith.muli %arg0, %c1_i32 : i32
    %1 = arith.addi %0, %arg2 : i32
    %c0_i32 = arith.constant 0 : i32
    return %arg1, %1 : i32, i32
  }
  func.func @transform_2(%arg0: i32, %arg1: i32, %arg2: i32) -> (i32, i32) {
    %c1_i32 = arith.constant 1 : i32
    %0 = arith.muli %arg0, %c1_i32 : i32
    %1 = arith.addi %0, %arg2 : i32
    %c0_i32 = arith.constant 0 : i32
    return %arg1, %1 : i32, i32
  }
  func.func @transform_3(%arg0: i32, %arg1: i32, %arg2: i32) -> (i32, i32, i32) {
    %c0_i32 = arith.constant 0 : i32
    %c0_i32_0 = arith.constant 0 : i32
    return %arg0, %arg1, %c0_i32 : i32, i32, i32
  }
  func.func @transform_4(%arg0: i32, %arg1: i32, %arg2: i32) -> (i32, i32, i32) {
    %c0_i32 = arith.constant 0 : i32
    %c0_i32_0 = arith.constant 0 : i32
    return %arg0, %arg1, %c0_i32 : i32, i32, i32
  }
  func.func @transform_5(%arg0: i32, %arg1: i32, %arg2: i32) -> (i32, i32, i32) {
    %c0_i32 = arith.constant 0 : i32
    %c0_i32_0 = arith.constant 0 : i32
    return %arg0, %arg1, %c0_i32 : i32, i32, i32
  }
}

</mosaic_0001>

<bundles_post_ra>
// kernel: tpu_custom_call.1
= control target key start
LH: loop header
LB: loop body
LE: loop exit
PB: predicated region body
PF: predicated region fallthrough
CT: control target
= control target key end

     0   :  { %11 = vsyncpa [#allocation3], 0  ;;  %s396_s0 = inlined_call_operand.hbm [shape: f32[4,256], index: 0, kind: input, shape index: {}]   ;;  %s397_s1 = inlined_call_operand.hbm [shape: f32[4,256], index: 1, kind: input, shape index: {}]   ;;  %s398_s2 = inlined_call_operand.hbm [shape: f32[4,256], index: 2, kind: input, shape index: {}]   ;;  %s399_s3 = inlined_call_operand.vmem [shape: f32[1,16,1], index: 3, kind: output, shape index: {0}]   ;;  %s400_s4 = inlined_call_operand.vmem [shape: f32[1,16,1], index: 4, kind: output, shape index: {1}]   ;;  %s401_s5 = inlined_call_operand.vmem [shape: f32[1,16,1], index: 5, kind: output, shape index: {2}]  }
   0x1   :  { %12 = vsyncpa [#allocation5], 0 }
   0x2   :  { %19 = vsyncadd [#allocation3], 384  ;;  %s276_s18 = smov [#allocation2]  }
   0x3   :  { %s22_s19 = sshll.u32 %s276_s18, 4  ;;  %s23_s19 = int_to_ptr.vmem [resolvable:$true] %s22_s19 }
   0x4   :  { %s220_s20 = scalar_lea.vmem %s23_s19, 128  ;;  %s224_s21 = scalar_lea.vmem %s23_s19, 512 }
   0x5   :  { %p221_p0 = scmp.ne.s32.totalorder %s23_s19, %s220_s20  ;;  %p225_p1 = scmp.lt.s32.totalorder %s23_s19, %s23_s19 }
   0x6   :  { %p226_p2 = scmp.lt.s32.totalorder %s224_s21, %s220_s20 }
   0x8   :  { %p227_p3 = por %p226_p2, %p225_p1 }
   0xa   :  { %p228_p4 = pnand %p227_p3, %p221_p0 }
   0xc   :  { %231 = shalt.err (!%p228_p4)
}
   0xd   :  { %s277_s22 = smov 128   ;;  %s278_s23 = smov 8  }
   0xe   :  { %28 = dma.hbm_to_vmem [thread:$0]  %s396_s0, 128, %s23_s19, [#allocation3], %s277_s22, %s277_s22, %s278_s23  }
   0xf   :  { %35 = vsyncadd [#allocation5], 384  ;;  %s279_s26 = smov [#allocation4]  }
  0x10   :  { %s38_s27 = sshll.u32 %s279_s26, 4  ;;  %s39_s27 = int_to_ptr.vmem [resolvable:$true] %s38_s27 }
  0x11   :  { %s240_s28 = scalar_lea.vmem %s39_s27, 128  ;;  %s244_s29 = scalar_lea.vmem %s39_s27, 512 }
  0x12   :  { %p241_p5 = scmp.ne.s32.totalorder %s39_s27, %s240_s28  ;;  %p245_p6 = scmp.lt.s32.totalorder %s39_s27, %s39_s27 }
  0x13   :  { %p246_p7 = scmp.lt.s32.totalorder %s244_s29, %s240_s28 }
  0x15   :  { %p247_p8 = por %p246_p7, %p245_p6 }
  0x17   :  { %p248_p9 = pnand %p247_p8, %p241_p5 }
  0x19   :  { %251 = shalt.err (!%p248_p9)
}
  0x1a   :  { %44 = dma.hbm_to_vmem [thread:$0]  %s397_s1, 128, %s39_s27, [#allocation5], %s277_s22, %s277_s22, %s278_s23  }
  0x1b   :  { %51 = vsyncadd [#allocation5], 384  ;;  %s280_s0 = smov [#allocation6]  }
  0x1c   :  { %s54_s7 = sshll.u32 %s280_s0, 4  ;;  %s55_s7 = int_to_ptr.vmem [resolvable:$true] %s54_s7 }
  0x1d   :  { %s260_s8 = scalar_lea.vmem %s55_s7, 128  ;;  %s264_s9 = scalar_lea.vmem %s55_s7, 512 }
  0x1e   :  { %p261_p10 = scmp.ne.s32.totalorder %s55_s7, %s260_s8  ;;  %p265_p11 = scmp.lt.s32.totalorder %s55_s7, %s55_s7 }
  0x1f   :  { %p266_p12 = scmp.lt.s32.totalorder %s264_s9, %s260_s8 }
  0x21   :  { %p267_p13 = por %p266_p12, %p265_p11 }
  0x23   :  { %p268_p0 = pnand %p267_p13, %p261_p10 }
  0x25   :  { %271 = shalt.err (!%p268_p0)
}
  0x26   :  { %60 = dma.hbm_to_vmem [thread:$0]  %s398_s2, 128, %s55_s7, [#allocation5], %s277_s22, %s277_s22, %s278_s23  }
  0x27   :  { %272 = dma.done.wait [#allocation3], 512  }
  0x28   :  { %273 = vsyncadd [#allocation3], 4294966784 }
  0x29   :  { %274 = dma.done.wait [#allocation5], 1024  }
  0x2a   :  { %275 = vsyncadd [#allocation5], 4294966272  ;;  %vm80_vm0 = vcmask 7168   ;;  %v281_v0 = vmov 0.0   ;;  %v87_v1 = vld [vmem:[#allocation2] sm:$0xff]  ;;  %v88_v2 = vld [vmem:[#allocation2 + $0x8] sm:$0xff] }
  0x2b   :  { %83 = vst.msk [vmem:[%s400_s4] sm:$0xff] %vm80_vm0, %v281_v0  ;;  %81 = vst.msk [vmem:[%s399_s3] sm:$0xff] %vm80_vm0, %v281_v0  ;;  %v95_v3 = vld [vmem:[#allocation6] sm:$0xff]  ;;  %v96_v4 = vld [vmem:[#allocation6 + $0x8] sm:$0xff] }
  0x2c   :  { %82 = vst.msk [vmem:[%s399_s3 + $0x8] sm:$0xff] %vm80_vm0, %v281_v0  ;;  %84 = vst.msk [vmem:[%s400_s4 + $0x8] sm:$0xff] %vm80_vm0, %v281_v0  ;;  %v99_v5 = vmul.f32 %v95_v3, %v87_v1  ;;  %v91_v6 = vld [vmem:[#allocation4] sm:$0xff]  ;;  %v92_v7 = vld [vmem:[#allocation4 + $0x8] sm:$0xff]  ;;  %v100_v8 = vmul.f32 %v96_v4, %v88_v2 }
  0x2d   :  { %85 = vst.msk [vmem:[%s401_s5] sm:$0xff] %vm80_vm0, %v281_v0  ;;  %86 = vst.msk [vmem:[%s401_s5 + $0x8] sm:$0xff] %vm80_vm0, %v281_v0  ;;  %v103_v9 = vmul.f32 %v95_v3, %v91_v6  ;;  %v104_v10 = vmul.f32 %v96_v4, %v92_v7  ;;  %v89_v11 = vld [vmem:[#allocation2 + $0x10] sm:$0xff]  ;;  %v90_v12 = vld [vmem:[#allocation2 + $0x18] sm:$0xff] }
  0x2e   :  { %v97_v13 = vld [vmem:[#allocation6 + $0x10] sm:$0xff]  ;;  %v138_v14 = vmul.f32 %v99_v5, %v99_v5  ;;  %v98_v15 = vld [vmem:[#allocation6 + $0x18] sm:$0xff]  ;;  %v139_v19 = vmul.f32 %v100_v8, %v100_v8 }
  0x2f   :  { %v101_v16 = vmul.f32 %v97_v13, %v89_v11  ;;  %v93_v17 = vld [vmem:[#allocation4 + $0x10] sm:$0xff]  ;;  %v94_v18 = vld [vmem:[#allocation4 + $0x18] sm:$0xff]  ;;  %v109_v20 = vmul.f32 %v103_v9, %v99_v5  ;;  %v110_v21 = vmul.f32 %v104_v10, %v100_v8  ;;  %v102_v22 = vmul.f32 %v98_v15, %v90_v12 }
  0x30   :  { %v105_v24 = vmul.f32 %v97_v13, %v93_v17  ;;  %v106_v25 = vmul.f32 %v98_v15, %v94_v18  ;;  %v166_v26 = vmul.f32 %v103_v9, %v103_v9  ;;  %v146_v27 = vcombine.low %v138_v14, %v139_v19 }
  0x31   :  { %v140_v23 = vmul.f32 %v101_v16, %v101_v16  ;;  %v147_v28 = vcombine.high %v138_v14, %v139_v19  ;;  %v117_v29 = vcombine.low %v109_v20, %v110_v21  ;;  %v118_v30 = vcombine.high %v109_v20, %v110_v21 }
  0x32   :  { %v141_v31 = vmul.f32 %v102_v22, %v102_v22  ;;  %v111_v32 = vmul.f32 %v105_v24, %v101_v16  ;;  %v112_v33 = vmul.f32 %v106_v25, %v102_v22  ;;  %v168_v34 = vmul.f32 %v105_v24, %v105_v24  ;;  %v136_v51 = vld [vmem:[%s400_s4] sm:$0xff] }
  0x33   :  { %v154_v35 = vadd.f32 %v147_v28, %v146_v27  ;;  %v125_v36 = vadd.f32 %v118_v30, %v117_v29  ;;  %v169_v37 = vmul.f32 %v106_v25, %v106_v25  ;;  %v167_v38 = vmul.f32 %v104_v10, %v104_v10  ;;  %v107_v52 = vld [vmem:[%s399_s3] sm:$0xff]  ;;  %v137_v57 = vld [vmem:[%s400_s4 + $0x8] sm:$0xff] }
  0x34   :  { %v148_v39 = vcombine.low %v140_v23, %v141_v31  ;;  %v149_v40 = vcombine.high %v140_v23, %v141_v31  ;;  %v119_v41 = vcombine.low %v111_v32, %v112_v33  ;;  %v120_v42 = vcombine.high %v111_v32, %v112_v33  ;;  %v108_v58 = vld [vmem:[%s399_s3 + $0x8] sm:$0xff]  ;;  %v164_v0 = vld [vmem:[%s401_s5] sm:$0xff] }
  0x35   :  { %155 = vadd.xlane.f32.xlu1 %v154_v35  ;;  %126 = vadd.xlane.f32.xlu0 %v125_v36  ;;  %v176_v43 = vcombine.low %v168_v34, %v169_v37  ;;  %v177_v44 = vcombine.high %v168_v34, %v169_v37  ;;  %v174_v45 = vcombine.low %v166_v26, %v167_v38  ;;  %v165_v63 = vld [vmem:[%s401_s5 + $0x8] sm:$0xff] }
  0x36   :  { %v157_v46 = vadd.f32 %v149_v40, %v148_v39  ;;  %v128_v47 = vadd.f32 %v120_v42, %v119_v41  ;;  %v175_v48 = vcombine.high %v166_v26, %v167_v38 }
  0x37   :  { %v185_v49 = vadd.f32 %v177_v44, %v176_v43 }
  0x38   :  { %v182_v50 = vadd.f32 %v175_v48, %v174_v45 }
  0x39   :  { %158 = vadd.xlane.f32.xlu1 %v157_v46  ;;  %129 = vadd.xlane.f32.xlu0 %v128_v47 }
  0x3d   :  { %186 = vadd.xlane.f32.xlu1 %v185_v49  ;;  %183 = vadd.xlane.f32.xlu0 %v182_v50 }
  0xbe   :  { %v156_v53 = vpop.xlane.xlu1 %155  ;;  %v127_v54 = vpop.xlane.xlu0 %126 }
  0xbf   :  { %v160_v55 = vadd.f32 %v156_v53, %v136_v51  ;;  %v131_v56 = vadd.f32 %v127_v54, %v107_v52 }
  0xc1   :  { %162 = vst.msk [vmem:[%s400_s4] sm:$0xff] %vm80_vm0, %v160_v55  ;;  %134 = vst.msk [vmem:[%s399_s3] sm:$0xff] %vm80_vm0, %v131_v56 }
  0xc2   :  { %v159_v59 = vpop.xlane.xlu1 %158  ;;  %v130_v60 = vpop.xlane.xlu0 %129 }
  0xc3   :  { %v161_v61 = vadd.f32 %v159_v59, %v137_v57  ;;  %v132_v62 = vadd.f32 %v130_v60, %v108_v58 }
  0xc5   :  { %163 = vst.msk [vmem:[%s400_s4 + $0x8] sm:$0xff] %vm80_vm0, %v161_v61  ;;  %135 = vst.msk [vmem:[%s399_s3 + $0x8] sm:$0xff] %vm80_vm0, %v132_v62 }
  0xc6   :  { %v187_v1 = vpop.xlane.xlu1 %186  ;;  %v184_v2 = vpop.xlane.xlu0 %183 }
  0xc7   :  { %v189_v3 = vadd.f32 %v187_v1, %v165_v63  ;;  %v188_v4 = vadd.f32 %v184_v2, %v164_v0 }
  0xc9   :  { %191 = vst.msk [vmem:[%s401_s5 + $0x8] sm:$0xff] %vm80_vm0, %v189_v3  ;;  %190 = vst.msk [vmem:[%s401_s5] sm:$0xff] %vm80_vm0, %v188_v4 }
  0xca   :  { %204 = vsyncpa [#allocation3], 1 }
  0xcb   :  { %205 = vsyncpa [#allocation5], 1 }

</bundles_post_ra>
